<compile_context>
chip_gen: v5e
topology: v5e:2x2
jax: 0.10.0
libtpu: 0.0.40
codegen_flags: <defaults>
</compile_context>

<pallas_src>
import math
from functools import partial

import jax
import jax.numpy as jnp
from jax.experimental import pallas as pl
from jax.experimental.pallas import tpu as pltpu


# --------------------------------------------------------------------------- #
# Kernels
# --------------------------------------------------------------------------- #
def _eq_linear_kernel(x_ref, wt_ref, b_ref, o_ref, *, w_scale, bias_scale, use_lrelu):
    """Single-K-block variant: x (tm, K) @ wt (K, tn) -> o (tm, tn)."""
    acc = jnp.dot(x_ref[...], wt_ref[...], preferred_element_type=jnp.float32)
    b = b_ref[...]
    if bias_scale != 1.0:               # static: only the lrelu path scales the bias row
        b = b * jnp.float32(bias_scale)
    acc = acc * jnp.float32(w_scale) + b
    if use_lrelu:
        # sqrt(2) already folded into w_scale / bias_scale -> only the select remains.
        acc = jnp.where(acc >= 0.0, acc, jnp.float32(0.2) * acc)
    o_ref[...] = acc.astype(o_ref.dtype)


def _eq_linear_kernel_ktiled(x_ref, wt_ref, b_ref, o_ref, acc_ref,
                             *, w_scale, bias_scale, use_lrelu):
    """K-tiled variant: accumulate partial dots in a f32 VMEM scratch."""
    k = pl.program_id(2)

    @pl.when(k == 0)
    def _init():
        acc_ref[...] = jnp.zeros_like(acc_ref)

    acc_ref[...] += jnp.dot(x_ref[...], wt_ref[...], preferred_element_type=jnp.float32)

    @pl.when(k == pl.num_programs(2) - 1)
    def _finalize():
        b = b_ref[...]
        if bias_scale != 1.0:
            b = b * jnp.float32(bias_scale)
        acc = acc_ref[...] * jnp.float32(w_scale) + b
        if use_lrelu:
            acc = jnp.where(acc >= 0.0, acc, jnp.float32(0.2) * acc)
        o_ref[...] = acc.astype(o_ref.dtype)


# --------------------------------------------------------------------------- #
# Hardware / feature detection
# --------------------------------------------------------------------------- #
def _tpu_hw_info():
    """(vmem_capacity_bytes, num_tensorcores_per_chip) with safe fallbacks."""
    kind = ""
    try:
        kind = jax.devices()[0].device_kind.lower()
    except Exception:
        pass
    vmem_cap = None
    try:
        vmem_cap = int(pltpu.get_tpu_info().vmem_capacity_bytes)
    except Exception:
        pass
    if vmem_cap is None or vmem_cap <= 0:
        vmem_cap = (64 << 20) if "v7" in kind else (128 << 20)
    num_tc = 2 if ("v7" in kind or vmem_cap <= (64 << 20)) else 1
    return vmem_cap, num_tc


_BUFFERED1_OK = None  # cached result of the one-time pl.Buffered(1) feature probe


def _probe_copy_kernel(x_ref, o_ref):
    o_ref[...] = x_ref[...]


def _buffered1_supported():
    """One-time feature probe: does this JAX accept pl.Buffered(1) on a
    grid-invariant input block?  Keeps the real kernel free of blanket
    try/except so genuine failures surface."""
    global _BUFFERED1_OK
    if _BUFFERED1_OK is None:
        try:
            fn = pl.pallas_call(
                _probe_copy_kernel,
                out_shape=jax.ShapeDtypeStruct((16, 128), jnp.float32),
                grid_spec=pltpu.PrefetchScalarGridSpec(
                    num_scalar_prefetch=0,
                    grid=(2,),
                    in_specs=[pl.BlockSpec((8, 128), lambda i: (0, 0),
                                           pipeline_mode=pl.Buffered(1))],
                    out_specs=pl.BlockSpec((8, 128), lambda i: (i, 0)),
                ),
            )
            jax.block_until_ready(fn(jnp.zeros((8, 128), jnp.float32)))
            _BUFFERED1_OK = True
        except Exception:
            _BUFFERED1_OK = False
    return _BUFFERED1_OK


# --------------------------------------------------------------------------- #
# Tiling helpers
# --------------------------------------------------------------------------- #
def _largest_tile(dim, limit, align):
    """Largest multiple of `align` dividing `dim` and <= limit (None if none)."""
    best = None
    t = align
    top = min(dim, limit)
    while t <= top:
        if dim % t == 0:
            best = t
        t += align
    return best


def _check_tile(name, t, dim, align):
    if t <= 0 or dim % t != 0:
        raise ValueError(f"{name}={t} must divide {dim}")
    if t != dim and t % align != 0:
        raise ValueError(f"{name}={t} must be a multiple of {align} (or equal {dim})")


def _plan_tiles(B, K, N, x_isz, w_isz, out_isz, vmem_cap, num_tc):
    """Pick (tm, tn, tk, batch_outer, vmem_limit_cap) for this generation."""
    # Compiler VMEM request cap: never above physical capacity minus headroom.
    #   v7x (64 MiB/TC) -> ~56 MiB; v5e/v6e (128 MiB) -> 96 MiB.
    vmem_limit_cap = int(max(min(vmem_cap - (8 << 20), 96 << 20), 16 << 20))
    plan_budget = max(vmem_limit_cap - (4 << 20), 8 << 20)

    # Sublane packing alignment for the row tile: f32 -> 8, bf16 -> 16, int8/fp8 -> 32.
    sub_align = max(8, 32 // max(1, x_isz))

    # ---- output-column tile tn: bound the resident weight slab ----------------
    # ~4 MiB budget on v7x, 8 MiB on v5e/v6e.  Once N is tiled the weight block
    # gets double-buffered, so the per-buffer target is half the budget.
    w_budget = min(vmem_cap // 16, 8 << 20)
    if K * N * w_isz <= w_budget or N % 128 != 0:
        tn = N
        # TODO(synk): N not a multiple of 128 cannot be tiled without padding; the
        # full-N slab may exceed the budget for very awkward (large, unaligned) N.
    else:
        max_tn = max(128, ((w_budget // 2) // max(1, K * w_isz)) // 128 * 128)
        tn = _largest_tile(N, max_tn, 128) or N
    nj = N // tn

    # ---- minimum legal row tile -----------------------------------------------
    tm_min = sub_align if (B % sub_align == 0 and B > sub_align) else B

    def _bytes(tm_, tk_):
        """Conservative working-set estimate (double-buffered weight assumed)."""
        nk_ = K // tk_
        return (2 * tk_ * tn * w_isz            # weight tiles
                + 2 * tn * 4                    # bias rows
                + 2 * tm_ * tk_ * x_isz         # x tiles (double-buffered)
                + 2 * tm_ * tn * out_isz        # output tiles (double-buffered)
                + tm_ * tn * 4                  # f32 epilogue intermediate
                + (tm_ * tn * 4 if nk_ > 1 else 0))   # explicit f32 accumulator

    # ---- contraction tile tk: only for very large K ----------------------------
    tk = K
    if K % 128 == 0 and _bytes(tm_min, K) > plan_budget:
        per_unit = 2 * tn * w_isz + 2 * tm_min * x_isz
        other = _bytes(tm_min, 128) - 128 * per_unit
        max_tk = max(128, ((plan_budget - other) // max(1, per_unit)) // 128 * 128)
        tk = _largest_tile(K, max_tk, 128) or K
    nk = K // tk

    # ---- row tile tm ------------------------------------------------------------
    # v5e/v6e (single TC, 128 MiB VMEM): allow big blocks (amortize grid overhead).
    # v7x (2 TCs, 64 MiB VMEM): keep blocks smaller and make sure both cores get work.
    gen_row_cap = 512 if num_tc >= 2 else 2048
    tm_cap = min(B, gen_row_cap)
    if num_tc >= 2 and nj == 1 and B % sub_align == 0 and B // 2 >= sub_align:
        tm_cap = min(tm_cap, B // 2)          # guarantee >=2 parallel batch steps on v7x

    if tm_min == B:
        tm = B
    else:
        tm = tm_min
        t = sub_align
        while t <= tm_cap:
            if B % t == 0 and _bytes(t, tk) <= plan_budget:
                tm = t
            t += sub_align
    ni = B // tm

    # ---- v7x: avoid a (1,1) spatial grid by splitting the output columns --------
    if num_tc >= 2 and ni == 1 and nj == 1 and N % 256 == 0:
        tn = N // 2
        nj = 2

    # ---- grid order: re-stream the cheaper operand -------------------------------
    if ni > 1 and nj > 1:
        traffic_batch_inner = nj * B * K * x_isz + K * N * w_isz   # N-outer / batch-inner
        traffic_col_inner = B * K * x_isz + ni * K * N * w_isz     # batch-outer / N-inner
        batch_outer = traffic_col_inner < traffic_batch_inner
    else:
        batch_outer = False

    return tm, tn, tk, batch_outer, vmem_limit_cap


# --------------------------------------------------------------------------- #
# Wrapper
# --------------------------------------------------------------------------- #
def equalized_linear(x, wt, bias_row, *, w_mul, activation=None,
                     tm=None, tn=None, tk=None):
    """EqualizedLinear forward.

    x        : (B, K) activations.
    wt       : (K, N) weight, pre-transposed from the PyTorch (N, K) layout
               (use prepare_equalized_linear_params once at init).
    bias_row : (1, N) float32 bias, already multiplied by b_mul.
    """
    B, K = x.shape
    K2, N = wt.shape
    if K2 != K:
        raise ValueError("weight must be pre-transposed to (in_dim, out_dim)")
    if bias_row.shape != (1, N):
        raise ValueError("bias_row must have shape (1, out_dim)")

    x_isz = x.dtype.itemsize
    w_isz = wt.dtype.itemsize
    out_isz = x.dtype.itemsize
    vmem_cap, num_tc = _tpu_hw_info()

    p_tm, p_tn, p_tk, batch_outer, vmem_limit_cap = _plan_tiles(
        B, K, N, x_isz, w_isz, out_isz, vmem_cap, num_tc)
    tm = p_tm if tm is None else tm
    tn = p_tn if tn is None else tn
    tk = p_tk if tk is None else tk
    _check_tile("tm", tm, B, 8)
    _check_tile("tn", tn, N, 128)
    _check_tile("tk", tk, K, 128)

    ni, nj, nk = B // tm, N // tn, K // tk

    use_lrelu = (activation == "lrelu")
    sqrt2 = math.sqrt(2.0)
    # lrelu: fold sqrt(2) into the scalar weight scale and the (1, tn) bias row
    # inside the kernel -> the epilogue is one scale+add and one compare/select.
    w_scale = float(w_mul) * (sqrt2 if use_lrelu else 1.0)
    bias_scale = sqrt2 if use_lrelu else 1.0

    # Grid-invariant weight/bias blocks: single-buffer them (halves their VMEM
    # footprint) only if the one-time feature probe says pl.Buffered(1) works.
    weight_invariant = (nj == 1 and nk == 1)
    single_buf = weight_invariant and _buffered1_supported()
    resident_kw = dict(pipeline_mode=pl.Buffered(1)) if single_buf else {}
    # TODO(synk): if profiling shows exposed DMA latency on the streamed x tile,
    # add pipeline_mode=pl.Buffered(3) to the x BlockSpec (cheap operand) only.

    # VMEM estimate (includes the f32 accumulator / epilogue intermediate).
    wbufs = 1 if single_buf else 2
    vmem_est = (wbufs * tk * tn * w_isz + wbufs * tn * 4
                + 2 * tm * tk * x_isz + 2 * tm * tn * out_isz
                + tm * tn * 4 + (tm * tn * 4 if nk > 1 else 0))
    vmem_limit = int(min(max(vmem_est + (4 << 20), 16 << 20), vmem_limit_cap))

    # Advisory cost estimate for the XLA scheduler.
    x_reads, w_reads = (1, ni) if batch_outer else (nj, 1)
    cost = pl.CostEstimate(
        flops=2 * B * K * N,
        transcendentals=0,
        bytes_accessed=int(x_reads * B * K * x_isz + w_reads * K * N * w_isz
                           + N * 4 + B * N * out_isz))

    # Grid + index maps (grid order chosen by operand size; K axis innermost).
    if nk == 1:
        kernel = partial(_eq_linear_kernel, w_scale=w_scale,
                         bias_scale=bias_scale, use_lrelu=use_lrelu)
        scratch_shapes = []
        dim_sem = ("parallel", "parallel")
        if batch_outer:
            grid = (ni, nj)
            x_map = lambda i, j: (i, 0)
            w_map = lambda i, j: (0, j)
            b_map = lambda i, j: (0, j)
            o_map = lambda i, j: (i, j)
        else:
            grid = (nj, ni)
            x_map = lambda j, i: (i, 0)
            w_map = lambda j, i: (0, j)
            b_map = lambda j, i: (0, j)
            o_map = lambda j, i: (i, j)
    else:
        kernel = partial(_eq_linear_kernel_ktiled, w_scale=w_scale,
                         bias_scale=bias_scale, use_lrelu=use_lrelu)
        scratch_shapes = [pltpu.VMEM((tm, tn), jnp.float32)]
        dim_sem = ("parallel", "parallel", "arbitrary")
        if batch_outer:
            grid = (ni, nj, nk)
            x_map = lambda i, j, k: (i, k)
            w_map = lambda i, j, k: (k, j)
            b_map = lambda i, j, k: (0, j)
            o_map = lambda i, j, k: (i, j)
        else:
            grid = (nj, ni, nk)
            x_map = lambda j, i, k: (i, k)
            w_map = lambda j, i, k: (k, j)
            b_map = lambda j, i, k: (0, j)
            o_map = lambda j, i, k: (i, j)

    in_specs = [
        pl.BlockSpec((tm, tk), x_map),                    # x tile (streamed)
        pl.BlockSpec((tk, tn), w_map, **resident_kw),     # weight tile
        pl.BlockSpec((1, tn), b_map, **resident_kw),      # bias row (f32, *b_mul)
    ]
    out_spec = pl.BlockSpec((tm, tn), o_map)

    fn = pl.pallas_call(
        kernel,
        out_shape=jax.ShapeDtypeStruct((B, N), x.dtype),
        grid_spec=pltpu.PrefetchScalarGridSpec(
            num_scalar_prefetch=0,
            grid=grid,
            in_specs=in_specs,
            out_specs=out_spec,
            scratch_shapes=scratch_shapes,
        ),
        compiler_params=pltpu.CompilerParams(
            dimension_semantics=dim_sem,
            vmem_limit_bytes=vmem_limit),
        cost_estimate=cost,
    )
    return fn(x, wt, bias_row)


# --------------------------------------------------------------------------- #
# Parameter init / one-time layout prep
# --------------------------------------------------------------------------- #
def init_equalized_linear_params(key, in_dim, out_dim, *, bias_init=0.0,
                                 gain=1.0, use_wscale=True, lrmul=1.0):
    """Synthetic init matching EqualizedLinear.__init__ (PyTorch (out, in) layout)."""
    he_std = gain * in_dim ** (-0.5)
    if use_wscale:
        init_std = 1.0 / lrmul
        w_mul = he_std * lrmul
    else:
        init_std = he_std / lrmul
        w_mul = lrmul
    weight = jax.random.normal(key, (out_dim, in_dim), jnp.float32) * init_std
    bias = jnp.full((out_dim,), bias_init, jnp.float32)
    b_mul = lrmul
    return weight, bias, w_mul, b_mul


def prepare_equalized_linear_params(weight, bias, b_mul):
    """One-time prep (at init, NOT per forward): transpose weight to (K, N) and
    pre-scale the bias by b_mul."""
    wt = jnp.asarray(weight).T                                   # (in_dim, out_dim)
    bias_row = (jnp.asarray(bias) * b_mul).astype(jnp.float32).reshape(1, -1)
    return wt, bias_row


def _reference(x, weight, bias, w_mul, b_mul, activation):
    y = x @ (weight * w_mul).T + bias * b_mul
    if activation == "lrelu":
        y = jnp.where(y >= 0, y, 0.2 * y) * math.sqrt(2.0)
    return y


# --------------------------------------------------------------------------- #
# Demo / correctness check
# --------------------------------------------------------------------------- #
if __name__ == "__main__":
    key = jax.random.PRNGKey(0)
    k1, k2, k3, k4 = jax.random.split(key, 4)

    # Case 1: lane-dense shapes (batch=16, in_dim=128, out_dim=256), both paths.
    B, Kd, Nd = 16, 128, 256
    x = jax.random.normal(k1, (B, Kd), jnp.float32)
    weight, bias, w_mul, b_mul = init_equalized_linear_params(
        k2, Kd, Nd, bias_init=0.1, gain=1.0, use_wscale=True, lrmul=0.5)
    wt, bias_row = prepare_equalized_linear_params(weight, bias, b_mul)

    out_lin = equalized_linear(x, wt, bias_row, w_mul=w_mul, activation=None)
    out_lr = equalized_linear(x, wt, bias_row, w_mul=w_mul, activation="lrelu")
    jax.block_until_ready(out_lin)
    jax.block_until_ready(out_lr)

    ref_lin = _reference(x, weight, bias, w_mul, b_mul, None)
    ref_lr = _reference(x, weight, bias, w_mul, b_mul, "lrelu")
    assert jnp.allclose(out_lin, ref_lin, atol=1e-4, rtol=1e-5)
    assert jnp.allclose(out_lr, ref_lr, atol=1e-4, rtol=1e-5)

    # Case 2: awkward small dims (batch=6, in=32, out=48) -> full-array blocks.
    B2, K2d, N2d = 6, 32, 48
    x2 = jax.random.normal(k3, (B2, K2d), jnp.float32)
    w2, b2, w_mul2, b_mul2 = init_equalized_linear_params(
        k4, K2d, N2d, bias_init=0.0, gain=1.0, use_wscale=True, lrmul=1.0)
    wt2, b2row = prepare_equalized_linear_params(w2, b2, b_mul2)
    out2 = equalized_linear(x2, wt2, b2row, w_mul=w_mul2, activation="lrelu")
    jax.block_until_ready(out2)
    ref2 = _reference(x2, w2, b2, w_mul2, b_mul2, "lrelu")
    assert jnp.allclose(out2, ref2, atol=1e-4, rtol=1e-5)

    print("KERNEL_OK")
</pallas_src>

<mosaic_0001>
module attributes {stable_mosaic.version = 11 : i64} {
  func.func @_probe_copy_kernel(%arg0: i32, %arg1: memref<8x128xf32, #tpu.memory_space<vmem>>, %arg2: memref<8x128xf32, #tpu.memory_space<vmem>>) attributes {dimension_semantics = [#tpu.dimension_semantics<arbitrary>], iteration_bounds = array<i64: 2>, scalar_prefetch = 0 : i64, scratch_operands = 0 : i64, tpu.core_type = #tpu.core_type<tc>, window_params = [{pipeline_mode = #tpu.pipeline_mode<synchronous>, transform_indices = @transform_0, window_bounds = array<i64: 8, 128>}, {transform_indices = @transform_1, window_bounds = array<i64: 8, 128>}]} {
    %c0 = arith.constant 0 : index
    %c0_0 = arith.constant 0 : index
    %0 = vector.load %arg1[%c0, %c0_0] : memref<8x128xf32, #tpu.memory_space<vmem>>, vector<8x128xf32>
    %c0_1 = arith.constant 0 : index
    %c0_2 = arith.constant 0 : index
    %1 = vector.load %arg2[%c0_1, %c0_2] : memref<8x128xf32, #tpu.memory_space<vmem>>, vector<8x128xf32>
    tpu.vector_store %arg2[%c0_1, %c0_2], %0 {strides = array<i32>} : memref<8x128xf32, #tpu.memory_space<vmem>>, vector<8x128xf32>,
    return
  }
  func.func @transform_0(%arg0: i32) -> (i32, i32) {
    %c0_i32 = arith.constant 0 : i32
    %c0_i32_0 = arith.constant 0 : i32
    %c0_i32_1 = arith.constant 0 : i32
    return %c0_i32, %c0_i32_0 : i32, i32
  }
  func.func @transform_1(%arg0: i32) -> (i32, i32) {
    %c0_i32 = arith.constant 0 : i32
    %c0_i32_0 = arith.constant 0 : i32
    return %arg0, %c0_i32 : i32, i32
  }
}

module attributes {stable_mosaic.version = 11 : i64} {
  func.func @_eq_linear_kernel(%arg0: i32, %arg1: i32, %arg2: memref<16x128xf32, #tpu.memory_space<vmem>>, %arg3: memref<128x256xf32, #tpu.memory_space<vmem>>, %arg4: memref<1x256xf32, #tpu.memory_space<vmem>>, %arg5: memref<16x256xf32, #tpu.memory_space<vmem>>) attributes {dimension_semantics = [#tpu.dimension_semantics<parallel>, #tpu.dimension_semantics<parallel>], iteration_bounds = array<i64: 1, 1>, scalar_prefetch = 0 : i64, scratch_operands = 0 : i64, tpu.core_type = #tpu.core_type<tc>, window_params = [{transform_indices = @transform_0, window_bounds = array<i64: 16, 128>}, {transform_indices = @transform_1, window_bounds = array<i64: 128, 256>}, {transform_indices = @transform_2, window_bounds = array<i64: 1, 256>}, {transform_indices = @transform_3, window_bounds = array<i64: 16, 256>}]} {
    %c0 = arith.constant 0 : index
    %c0_0 = arith.constant 0 : index
    %0 = vector.load %arg2[%c0, %c0_0] : memref<16x128xf32, #tpu.memory_space<vmem>>, vector<16x128xf32>
    %c0_1 = arith.constant 0 : index
    %c0_2 = arith.constant 0 : index
    %1 = vector.load %arg3[%c0_1, %c0_2] : memref<128x256xf32, #tpu.memory_space<vmem>>, vector<128x256xf32>
    %cst = arith.constant dense<0.000000e+00> : vector<16x256xf32>
    %2 = tpu.matmul %0, %1, %cst {dimension_numbers = #tpu.dot_dimension_numbers<[1], [0], [0], [1], [0, 0, 1, 1], [], []>} : vector<16x128xf32>, vector<128x256xf32>, vector<16x256xf32> -> vector<16x256xf32>
    %c0_3 = arith.constant 0 : index
    %c0_4 = arith.constant 0 : index
    %3 = vector.load %arg4[%c0_3, %c0_4] : memref<1x256xf32, #tpu.memory_space<vmem>>, vector<1x256xf32>
    %cst_5 = arith.constant 0.0441941731 : f32
    %4 = vector.broadcast %cst_5 : f32 to vector<16x256xf32>
    %5 = arith.mulf %2, %4 : vector<16x256xf32>
    %6 = vector.broadcast %3 : vector<1x256xf32> to vector<16x256xf32>
    %7 = arith.addf %5, %6 : vector<16x256xf32>
    %c0_6 = arith.constant 0 : index
    %c0_7 = arith.constant 0 : index
    %8 = vector.load %arg5[%c0_6, %c0_7] : memref<16x256xf32, #tpu.memory_space<vmem>>, vector<16x256xf32>
    tpu.vector_store %arg5[%c0_6, %c0_7], %7 {strides = array<i32>} : memref<16x256xf32, #tpu.memory_space<vmem>>, vector<16x256xf32>,
    return
  }
  func.func @transform_0(%arg0: i32, %arg1: i32) -> (i32, i32) {
    %c0_i32 = arith.constant 0 : i32
    %c0_i32_0 = arith.constant 0 : i32
    return %arg1, %c0_i32 : i32, i32
  }
  func.func @transform_1(%arg0: i32, %arg1: i32) -> (i32, i32) {
    %c0_i32 = arith.constant 0 : i32
    %c0_i32_0 = arith.constant 0 : i32
    return %c0_i32, %arg0 : i32, i32
  }
  func.func @transform_2(%arg0: i32, %arg1: i32) -> (i32, i32) {
    %c0_i32 = arith.constant 0 : i32
    %c0_i32_0 = arith.constant 0 : i32
    return %c0_i32, %arg0 : i32, i32
  }
  func.func @transform_3(%arg0: i32, %arg1: i32) -> (i32, i32) {
    %c0_i32 = arith.constant 0 : i32
    return %arg1, %arg0 : i32, i32
  }
}

</mosaic_0001>

<bundles_post_ra>
// kernel: tpu_custom_call.1
= control target key start
LH: loop header
LB: loop body
LE: loop exit
PB: predicated region body
PF: predicated region fallthrough
CT: control target
= control target key end

     0   :  { %6 = vsyncpa [#allocation3], 0  ;;  %s440_s0 = inlined_call_operand.hbm [shape: f32[8,128], index: 0, kind: input, shape index: {}]   ;;  %s441_s1 = inlined_call_operand.hbm [shape: f32[16,128], index: 1, kind: output, shape index: {}]  }
   0x1   :  { %7 = vsyncpa [#allocation4], 0 }
   0x2   :  { %9 = vsyncpa [#allocation4 + $0x1], 0  ;;  %s356_s6 = smov 0   ;;  %s358_s7 = smov 0  }
   0x3   :  { %s360_s8 = smov 0   ;;  %s362_s9 = smov 0  }
   0x4 LB: > { %s377_s10 = sadd.s32 4294967295, %s343_s9   ;;  %s187_s11 = sadd.s32 4294967294, %s343_s9   ;;  %s343_s9 = sphi %s362_s9, %s447_s9   ;;  %s339_s8 = sphi %s360_s8, %s446_s8   ;;  %s335_s7 = sphi %s358_s7, %s445_s7   ;;  %s331_s6 = sphi %s356_s6, %s444_s6  }
   0x5   : > { %s381_s12 = sadd.s32 1, %s343_s9   ;;  %s43_s13 = sadd.s32 1, %s339_s8 }
   0x6   : > { %s40_s14 = ssub.s32 %s343_s9, %s381_s12  ;;  %p53_p0 = scmp.ne.s32.totalorder %s339_s8, %s335_s7 }
   0x7   : > { %p41_p1 = scmp.eq.s32.totalorder %s40_s14, 0  ;;  %p54_p2 = scmp.eq.s32.totalorder %s377_s10, 1 }
   0x8   : > { %p59_p3 = scmp.ne.s32.totalorder %s335_s7, %s331_s6  ;;  %p60_p4 = scmp.eq.s32.totalorder %s187_s11, 1 }
   0x9   : > { %s392_s15 = scalar_select %p41_p1, %s339_s8, %s43_s13  }
   0xa   : > { %p394_p5 = por %p54_p2, %p53_p0  ;;  %p398_p6 = por %p60_p4, %p59_p3 }
   0xb   : > { %p188_p7 = scmp.ge.s32.totalorder %s343_s9, 1  ;;  %p67_p8 = scmp.lt.s32.totalorder %s343_s9, 3 }
   0xc   : > { %p211_p9 = scmp.eq.s32.totalorder %s377_s10, 0  ;;  %s79_s20 = sshll.u32 %s440_s0, 4  ;;  %s80_s20 = int_to_ptr.hbm [resolvable:$true] %s79_s20 }
   0xd   : > { %p68_p10 = pnand %p188_p7, %p67_p8  ;;  %s345_s21 = smov [#allocation2]  }
   0xe   : > { %s81_s22 = sshll.u32 %s345_s21, 4  ;;  %s82_s22 = int_to_ptr.vmem [resolvable:$true] %s81_s22 }
   0xf   : > { %p203_p11 = pneg %p68_p10  ;;  %94 = sbr.rel (%p68_p10) target bundleno = 37 (0x25), region = 24 }
  0x11   : > { %p204_p12 = pnand %p211_p9, %p203_p11 }
  0x13   : > { %206 = dma.hbm_to_vmem [thread:$0]  (!%p204_p12), %s80_s20, 128, %s82_s22, [#allocation3]  }
  0x14   : > { %322 = dma.done.wait (%p211_p9), [#allocation3], 128  }
  0x15   : > { %324 = vsyncadd (%p211_p9), [#allocation3], 4294967168  ;;  %s107_s23 = sand.u32 1, %s335_s7   ;;  %s194_s24 = sshll.u32 %s377_s10, 3  ;;  %v110_v0 = vld [vmem:[#allocation2] sm:$0xff] }
  0x16   : > { %s192_s25 = sshll.u32 %s107_s23, 3  ;;  %s123_s28 = scalar_lea.hbm %s441_s1, %s194_s24 }
  0x17   : > { %s109_s29 = scalar_lea.vmem [#allocation5], %s192_s25  ;;  %s127_s2 = sshll.u32 %s123_s28, 4  ;;  %s128_s2 = int_to_ptr.hbm [resolvable:$true] %s127_s2 }
  0x18   : > { %s125_s30 = sshll.u32 %s109_s29, 4  ;;  %111 = vst [vmem:[%s109_s29] sm:$0xff] %v110_v0  ;;  %s113_s3 = scalar_lea.sflag [#allocation4], %s107_s23  ;;  %s126_s30 = int_to_ptr.vmem [resolvable:$true] %s125_s30 }
  0x19   : > { %s291_s4 = sshra.s32 %s128_s2, 4  ;;  %s297_s13 = scalar_lea.hbm %s441_s1, 16  ;;  %s292_s4 = int_to_ptr.hbm [resolvable:$true] %s291_s4 }
  0x1a   : > { %s293_s5 = scalar_lea.hbm %s292_s4, 8  ;;  %p298_p2 = scmp.lt.s32.totalorder %s292_s4, %s441_s1 }
  0x1b   : > { %p294_p13 = scmp.ne.s32.totalorder %s292_s4, %s293_s5  ;;  %p299_p3 = scmp.lt.s32.totalorder %s297_s13, %s293_s5 }
  0x1d   : > { %p295_p0 = pnand %p294_p13, %p394_p5  ;;  %p300_p4 = por %p299_p3, %p298_p2 }
  0x1f   : > { %p296_p1 = pneg %p295_p0 }
  0x21   : > { %p301_p7 = pnand %p300_p4, %p296_p1 }
  0x23   : > { %304 = shalt.err (!%p301_p7)
}
  0x24   : > { %201 = dma.vmem_to_hbm [thread:$0]  (%p394_p5), %s126_s30, 128, %s128_s2, %s113_s3  }
  0x25 PF: > { %p213_p8 = scmp.ge.s32.totalorder %s343_s9, 2  ;;  %s139_s19 = sand.u32 1, %s331_s6  }
  0x26   : > { %s140_s20 = scalar_lea.sflag [#allocation4], %s139_s19 }
  0x27   : > { %p208_p9 = pnand %p213_p8, %p398_p6 }
  0x29   : > { %p209_p10 = pneg %p208_p9 }
  0x2b   : > { %326 = dma.done.wait (%p209_p10), %s140_s20, 128  }
  0x2c   : > { %328 = vsyncadd (%p209_p10), %s140_s20, 4294967168  ;;  %p12_p11 = scmp.ge.s32.totalorder %s381_s12, 4   ;;  %s444_s6 = smov %s335_s7 }
  0x2d   : > { %s445_s7 = smov %s339_s8  ;;  %s446_s8 = smov %s392_s15 }
  0x2e   : > { %s447_s9 = smov %s381_s12  ;;  %14 = sbr.rel (!%p12_p11) target bundleno = 4 (0x4), region = 61 }
  0x33   :  { %146 = vsyncpa [#allocation3], 1 }
  0x34   :  { %148 = vsyncpa [#allocation3 + $0x1], 1 }
  0x35   :  { %149 = vsyncpa [#allocation4], 1 }
  0x36   :  { %151 = vsyncpa [#allocation4 + $0x1], 1 }

// kernel: tpu_custom_call.1
= control target key start
LH: loop header
LB: loop body
LE: loop exit
PB: predicated region body
PF: predicated region fallthrough
CT: control target
= control target key end

     0   :  { %8 = vsyncpa [#allocation3], 0  ;;  %s366_s0 = inlined_call_operand.hbm [shape: f32[16,128], index: 0, kind: input, shape index: {}]   ;;  %s367_s1 = inlined_call_operand.hbm [shape: f32[128,256], index: 1, kind: input, shape index: {}]   ;;  %s368_s2 = inlined_call_operand.hbm [shape: f32[1,256], index: 2, kind: input, shape index: {}]   ;;  %s369_s3 = inlined_call_operand.hbm [shape: f32[16,256], index: 3, kind: output, shape index: {}]  }
   0x1   :  { %9 = vsyncpa [#allocation6], 0  ;;  %s28_s14 = sshll.u32 %s367_s1, 4  ;;  %s29_s14 = int_to_ptr.hbm [resolvable:$true] %s28_s14 }
   0x2   :  { %10 = vsyncpa [#allocation4], 0  ;;  %s320_s15 = smov [#allocation5]   ;;  %s15_s19 = sshll.u32 %s366_s0, 4  ;;  %s16_s19 = int_to_ptr.hbm [resolvable:$true] %s15_s19 }
   0x3   :  { %s30_s16 = sshll.u32 %s320_s15, 4  ;;  %s321_s20 = smov 256   ;;  %s31_s16 = int_to_ptr.vmem [resolvable:$true] %s30_s16 }
   0x4   :  { %s322_s21 = smov 16   ;;  %s323_s22 = smov [#allocation2]  }
   0x5   :  { %36 = dma.hbm_to_vmem [thread:$0]  %s29_s14, 4096, %s31_s16, [#allocation6], %s321_s20, %s321_s20, %s322_s21  }
   0x6   :  { %s17_s23 = sshll.u32 %s323_s22, 4  ;;  %s324_s1 = smov 128   ;;  %s18_s23 = int_to_ptr.vmem [resolvable:$true] %s17_s23 }
   0x7   :  { %s325_s24 = smov 8   ;;  %s42_s27 = sshll.u32 %s368_s2, 4  ;;  %s43_s27 = int_to_ptr.hbm [resolvable:$true] %s42_s27 }
   0x8   :  { %23 = dma.hbm_to_vmem [thread:$0]  %s16_s19, 256, %s18_s23, [#allocation3], %s324_s1, %s324_s1, %s325_s24  }
   0x9   :  { %s326_s28 = smov [#allocation7]  }
   0xa   :  { %s44_s0 = sshll.u32 %s326_s28, 4  ;;  %s45_s0 = int_to_ptr.vmem [resolvable:$true] %s44_s0 }
   0xb   :  { %47 = dma.hbm_to_vmem [thread:$0]  %s43_s27, 32, %s45_s0, [#allocation6]  }
   0xc   :  { %314 = dma.done.wait [#allocation3], 256  }
   0xd   :  { %315 = vsyncadd [#allocation3], 4294967040 }
   0xe   :  { %316 = dma.done.wait [#allocation6], 4128  }
   0xf   :  { %317 = vsyncadd [#allocation6], 4294963168  ;;  %v92_v0 = vld [vmem:[#allocation5 + $0xf0] sm:$0xff]  ;;  %v93_v1 = vld [vmem:[#allocation5 + $0xf8] sm:$0xff]  ;;  %s327_s2 = smov [#allocation8]   ;;  %s164_s5 = sshll.u32 %s369_s3, 4  ;;  %s165_s5 = int_to_ptr.hbm [resolvable:$true] %s164_s5 }
  0x10   :  { %v90_v2 = vld [vmem:[#allocation5 + $0xe0] sm:$0xff]  ;;  %178 = vmatpush.msra.mxu2 %v92_v0  ;;  %194 = vmatpush.msra.mxu3 %v93_v1  ;;  %v91_v3 = vld [vmem:[#allocation5 + $0xe8] sm:$0xff]  ;;  %v88_v4 = vld [vmem:[#allocation5 + $0xd0] sm:$0xff]  ;;  %s162_s29 = sshll.u32 %s327_s2, 4  ;;  %s163_s29 = int_to_ptr.vmem [resolvable:$true] %s162_s29 }
  0x11   :  { %v89_v5 = vld [vmem:[#allocation5 + $0xd8] sm:$0xff]  ;;  %94 = vmatpush.msra.mxu0 %v92_v0  ;;  %117 = vmatpush.msra.mxu1 %v93_v1  ;;  %v86_v6 = vld [vmem:[#allocation5 + $0xc0] sm:$0xff]  ;;  %v87_v7 = vld [vmem:[#allocation5 + $0xc8] sm:$0xff] }
  0x12   :  { %179 = vmatpush.msra.mxu2 %v90_v2  ;;  %195 = vmatpush.msra.mxu3 %v91_v3  ;;  %v84_v8 = vld [vmem:[#allocation5 + $0xb0] sm:$0xff]  ;;  %v85_v9 = vld [vmem:[#allocation5 + $0xb8] sm:$0xff]  ;;  %v82_v10 = vld [vmem:[#allocation5 + $0xa0] sm:$0xff] }
  0x13   :  { %95 = vmatpush.msra.mxu0 %v90_v2  ;;  %118 = vmatpush.msra.mxu1 %v91_v3  ;;  %v83_v11 = vld [vmem:[#allocation5 + $0xa8] sm:$0xff]  ;;  %v80_v12 = vld [vmem:[#allocation5 + $0x90] sm:$0xff]  ;;  %v81_v13 = vld [vmem:[#allocation5 + $0x98] sm:$0xff] }
  0x14   :  { %180 = vmatpush.msra.mxu2 %v88_v4  ;;  %196 = vmatpush.msra.mxu3 %v89_v5  ;;  %v78_v14 = vld [vmem:[#allocation5 + $0x80] sm:$0xff]  ;;  %v79_v15 = vld [vmem:[#allocation5 + $0x88] sm:$0xff]  ;;  %v76_v16 = vld [vmem:[#allocation5 + $0x70] sm:$0xff] }
  0x15   :  { %96 = vmatpush.msra.mxu0 %v88_v4  ;;  %119 = vmatpush.msra.mxu1 %v89_v5  ;;  %v77_v17 = vld [vmem:[#allocation5 + $0x78] sm:$0xff]  ;;  %v74_v18 = vld [vmem:[#allocation5 + $0x60] sm:$0xff]  ;;  %v75_v19 = vld [vmem:[#allocation5 + $0x68] sm:$0xff] }
  0x16   :  { %181 = vmatpush.msra.mxu2 %v86_v6  ;;  %197 = vmatpush.msra.mxu3 %v87_v7  ;;  %v72_v20 = vld [vmem:[#allocation5 + $0x50] sm:$0xff]  ;;  %v73_v21 = vld [vmem:[#allocation5 + $0x58] sm:$0xff]  ;;  %v70_v22 = vld [vmem:[#allocation5 + $0x40] sm:$0xff] }
  0x17   :  { %97 = vmatpush.msra.mxu0 %v86_v6  ;;  %120 = vmatpush.msra.mxu1 %v87_v7  ;;  %v71_v23 = vld [vmem:[#allocation5 + $0x48] sm:$0xff]  ;;  %v68_v24 = vld [vmem:[#allocation5 + $0x30] sm:$0xff]  ;;  %v69_v25 = vld [vmem:[#allocation5 + $0x38] sm:$0xff] }
  0x18   :  { %182 = vmatpush.msra.mxu2 %v84_v8  ;;  %198 = vmatpush.msra.mxu3 %v85_v9  ;;  %v66_v26 = vld [vmem:[#allocation5 + $0x20] sm:$0xff]  ;;  %v67_v27 = vld [vmem:[#allocation5 + $0x28] sm:$0xff]  ;;  %v64_v28 = vld [vmem:[#allocation5 + $0x10] sm:$0xff] }
  0x19   :  { %98 = vmatpush.msra.mxu0 %v84_v8  ;;  %121 = vmatpush.msra.mxu1 %v85_v9  ;;  %v65_v29 = vld [vmem:[#allocation5 + $0x18] sm:$0xff]  ;;  %v62_v30 = vld [vmem:[#allocation5] sm:$0xff]  ;;  %v63_v31 = vld [vmem:[#allocation5 + $0x8] sm:$0xff] }
  0x1a   :  { %183 = vmatpush.msra.mxu2 %v82_v10  ;;  %199 = vmatpush.msra.mxu3 %v83_v11  ;;  %v61_v32 = vld [vmem:[#allocation2 + $0x8] sm:$0xff]  ;;  %v60_v33 = vld [vmem:[#allocation2] sm:$0xff]  ;;  %v140_v34 = vld [vmem:[#allocation7] sm:$0x3] }
  0x1b   :  { %99 = vmatpush.msra.mxu0 %v82_v10  ;;  %122 = vmatpush.msra.mxu1 %v83_v11  ;;  %v146_v35 = vperm.slane %v140_v34, 0  ;;  %v147_v36 = vperm.slane %v140_v34, 1 }
  0x1c   :  { %184 = vmatpush.msra.mxu2 %v80_v12  ;;  %200 = vmatpush.msra.mxu3 %v81_v13 }
  0x1d   :  { %100 = vmatpush.msra.mxu0 %v80_v12  ;;  %123 = vmatpush.msra.mxu1 %v81_v13 }
  0x1e   :  { %185 = vmatpush.msra.mxu2 %v78_v14  ;;  %201 = vmatpush.msra.mxu3 %v79_v15 }
  0x1f   :  { %101 = vmatpush.msra.mxu0 %v78_v14  ;;  %124 = vmatpush.msra.mxu1 %v79_v15 }
  0x20   :  { %186 = vmatpush.msra.mxu2 %v76_v16  ;;  %202 = vmatpush.msra.mxu3 %v77_v17 }
  0x21   :  { %102 = vmatpush.msra.mxu0 %v76_v16  ;;  %125 = vmatpush.msra.mxu1 %v77_v17 }
  0x22   :  { %187 = vmatpush.msra.mxu2 %v74_v18  ;;  %203 = vmatpush.msra.mxu3 %v75_v19 }
  0x23   :  { %103 = vmatpush.msra.mxu0 %v74_v18  ;;  %126 = vmatpush.msra.mxu1 %v75_v19 }
  0x24   :  { %188 = vmatpush.msra.mxu2 %v72_v20  ;;  %204 = vmatpush.msra.mxu3 %v73_v21 }
  0x25   :  { %104 = vmatpush.msra.mxu0 %v72_v20  ;;  %127 = vmatpush.msra.mxu1 %v73_v21 }
  0x26   :  { %189 = vmatpush.msra.mxu2 %v70_v22  ;;  %205 = vmatpush.msra.mxu3 %v71_v23 }
  0x27   :  { %105 = vmatpush.msra.mxu0 %v70_v22  ;;  %128 = vmatpush.msra.mxu1 %v71_v23 }
  0x28   :  { %190 = vmatpush.msra.mxu2 %v68_v24  ;;  %206 = vmatpush.msra.mxu3 %v69_v25 }
  0x29   :  { %106 = vmatpush.msra.mxu0 %v68_v24  ;;  %129 = vmatpush.msra.mxu1 %v69_v25 }
  0x2a   :  { %191 = vmatpush.msra.mxu2 %v66_v26  ;;  %207 = vmatpush.msra.mxu3 %v67_v27 }
  0x2b   :  { %107 = vmatpush.msra.mxu0 %v66_v26  ;;  %130 = vmatpush.msra.mxu1 %v67_v27 }
  0x2c   :  { %192 = vmatpush.msra.mxu2 %v64_v28  ;;  %208 = vmatpush.msra.mxu3 %v65_v29 }
  0x2d   :  { %108 = vmatpush.msra.mxu0 %v64_v28  ;;  %131 = vmatpush.msra.mxu1 %v65_v29 }
  0x2e   :  { %193 = vmatpush.msra.mxu2 %v62_v30  ;;  %209 = vmatpush.msra.mxu3 %v63_v31 }
  0x2f   :  { %113 = vmatmul.f32.vlgmr.msra.gmra.mxu2 %v61_v32  ;;  %136 = vmatmul.f32.vlgmr.msra.gmra.mxu3 %v61_v32 }
  0x30   :  { %109 = vmatpush.msra.mxu0 %v62_v30  ;;  %132 = vmatpush.msra.mxu1 %v63_v31 }
  0x31   :  { %110 = vmatmul.f32.vlgmr.msra.gmra.mxu0 %v60_v33  ;;  %133 = vmatmul.f32.vlgmr.msra.gmra.mxu1 %v60_v33 }
  0xae   :  { %v111_v37 = vpop.f32.mrf.mxu0  ;;  %v134_v38 = vpop.f32.mrf.mxu1 }
  0xaf   :  { %v141_v39 = vmul.f32 0.044194173, %v111_v37  ;;  %v142_v40 = vmul.f32 0.044194173, %v134_v38 }
  0xb1   :  { %v150_v41 = vadd.f32 %v146_v35, %v141_v39  ;;  %v151_v42 = vadd.f32 %v147_v36, %v142_v40 }
  0xb2   :  { %v114_v43 = vpop.f32.mrf.mxu2  ;;  %v137_v44 = vpop.f32.mrf.mxu3 }
  0xb3   :  { %154 = vst [vmem:[#allocation8] sm:$0xff] %v150_v41  ;;  %v143_v45 = vmul.f32 0.044194173, %v114_v43  ;;  %v144_v46 = vmul.f32 0.044194173, %v137_v44 }
  0xb4   :  { %155 = vst [vmem:[#allocation8 + $0x8] sm:$0xff] %v151_v42 }
  0xb5   :  { %v152_v47 = vadd.f32 %v146_v35, %v143_v45  ;;  %v153_v48 = vadd.f32 %v147_v36, %v144_v46 }
  0xb7   :  { %156 = vst [vmem:[#allocation8 + $0x10] sm:$0xff] %v152_v47 }
  0xb8   :  { %157 = vst [vmem:[#allocation8 + $0x18] sm:$0xff] %v153_v48 }
  0xb9   :  { %170 = dma.vmem_to_hbm [thread:$0]  %s163_s29, 512, %s165_s5, [#allocation4], %s321_s20, %s321_s20, %s322_s21  }
  0xba   :  { %318 = dma.done.wait [#allocation4], 512  }
  0xbb   :  { %319 = vsyncadd [#allocation4], 4294966784 }
  0xbc   :  { %175 = vsyncpa [#allocation3], 1 }
  0xbd   :  { %176 = vsyncpa [#allocation6], 1 }
  0xbe   :  { %177 = vsyncpa [#allocation4], 1 }

</bundles_post_ra>
